<compile_context>
chip_gen: v7x
topology: tpu7x:2x2x1
jax: 0.10.0
libtpu: 0.0.40
codegen_flags: <defaults>
</compile_context>

<pallas_src>
import functools

import jax
import jax.numpy as jnp
from jax.experimental import pallas as pl
from jax.experimental.pallas import tpu as pltpu


def _round_up(x, m):
    return ((x + m - 1) // m) * m


def _stein_kernel(x_ref, syn_ref, mem_ref,
                  spk_ref, syn_out_ref, mem_out_ref,
                  *, alpha, beta, threshold):
    mem = mem_ref[...]
    # Heaviside step on shifted membrane potential (spike generation).
    mem_shift = mem - threshold
    spk = (mem_shift >= 0.0).astype(spk_ref.dtype)
    # Synaptic current decay + input injection.
    syn_new = alpha * syn_ref[...] + x_ref[...]
    # Membrane potential decay + synaptic drive - reset (reset == spk).
    mem_new = beta * mem + syn_new - spk.astype(mem.dtype)

    spk_ref[...] = spk
    syn_out_ref[...] = syn_new.astype(syn_out_ref.dtype)
    mem_out_ref[...] = mem_new.astype(mem_out_ref.dtype)


def stein_forward(input_, syn, mem, *, alpha, beta, threshold=1.0,
                  max_block_bytes=1 << 20):
    """Stein LIF forward. input_/syn/mem: same shape, float32.

    Returns (spk, syn_new, mem_new), each with the original shape.
    """
    assert input_.shape == syn.shape == mem.shape
    orig_shape = input_.shape
    dtype = input_.dtype
    itemsize = jnp.dtype(dtype).itemsize

    n = 1
    for d in orig_shape:
        n *= int(d)

    # ---- Choose a sublane-full, lane-dense slab geometry ----------------
    # Lane (last) dim: large multiple of 128 for unmasked wide stores; use a
    # narrower lane for tiny problems to avoid excessive padding.
    lane = 1024 if n >= 8 * 1024 else 128
    rows = -(-n // lane)
    rows8 = _round_up(rows, 8)

    # Row tile: multiple of 8, capped so each per-array block is ~1 MiB
    # (6 arrays x 2 pipeline buffers ~= 12 MiB VMEM -> fits v5e/v6e/v7x).
    tr_cap = max(8, (max_block_bytes // (lane * itemsize)) // 8 * 8)
    tr = min(tr_cap, rows8)
    # v7x has 2 TensorCores: prefer >= 2 parallel grid steps when there is
    # enough work to split.
    if rows8 // tr < 2 and rows8 >= 16:
        tr = max(8, _round_up(rows8 // 2, 8))
    r_pad = _round_up(rows8, tr)
    n_pad = r_pad * lane
    grid = (r_pad // tr,)

    # ---- Wrapper-side padding / reshape to (r_pad, lane) ----------------
    def _prep(a):
        a1 = a.reshape(-1)
        if n_pad != n:
            a1 = jnp.pad(a1, (0, n_pad - n))
        return a1.reshape(r_pad, lane)

    x2 = _prep(input_)
    syn2 = _prep(syn)
    mem2 = _prep(mem)

    block = pl.BlockSpec((tr, lane), lambda i: (i, 0))

    kernel = functools.partial(_stein_kernel,
                               alpha=float(alpha),
                               beta=float(beta),
                               threshold=float(threshold))

    spk2, syn_new2, mem_new2 = pl.pallas_call(
        kernel,
        out_shape=(
            jax.ShapeDtypeStruct((r_pad, lane), dtype),
            jax.ShapeDtypeStruct((r_pad, lane), dtype),
            jax.ShapeDtypeStruct((r_pad, lane), dtype),
        ),
        grid=grid,
        in_specs=[block, block, block],
        out_specs=[block, block, block],
        # syn -> syn_out, mem -> mem_out: avoids extra HBM allocations.
        input_output_aliases={1: 1, 2: 2},
        cost_estimate=pl.CostEstimate(
            flops=5 * n_pad,
            transcendentals=0,
            bytes_accessed=6 * n_pad * itemsize,
        ),
        compiler_params=pltpu.CompilerParams(
            dimension_semantics=("parallel",),
            vmem_limit_bytes=32 << 20,
        ),
    )(x2, syn2, mem2)

    def _unprep(a):
        return a.reshape(-1)[:n].reshape(orig_shape)

    # TODO(synk): spk is binary and could be emitted as bf16/int8 to cut HBM
    # traffic ~10%; kept float32 to match the PyTorch module's output dtype.
    return _unprep(spk2), _unprep(syn_new2), _unprep(mem_new2)


def _stein_ref(input_, syn, mem, alpha, beta, threshold):
    """Pure-JAX reference mirroring the PyTorch forward."""
    mem_shift = mem - threshold
    spk = (mem_shift >= 0.0).astype(input_.dtype)
    reset = spk
    syn_new = alpha * syn + input_
    mem_new = beta * mem + syn_new - reset
    return spk, syn_new, mem_new


if __name__ == "__main__":
    alpha, beta, threshold = 0.9, 0.5, 1.0

    key = jax.random.PRNGKey(0)
    k1, k2, k3 = jax.random.split(key, 3)

    # Small NCHW shapes: batch=2, channels=4, spatial=16x16
    shape = (2, 4, 16, 16)
    input_ = jax.random.normal(k1, shape, dtype=jnp.float32)
    syn = jax.random.normal(k2, shape, dtype=jnp.float32) * 0.1
    mem = jax.random.normal(k3, shape, dtype=jnp.float32) + 0.5  # some above threshold

    spk, syn_new, mem_new = stein_forward(
        input_, syn, mem, alpha=alpha, beta=beta, threshold=threshold)
    jax.block_until_ready((spk, syn_new, mem_new))

    # Correctness check against the pure-JAX reference.
    spk_r, syn_r, mem_r = _stein_ref(input_, syn, mem, alpha, beta, threshold)
    assert jnp.allclose(spk, spk_r), "spk mismatch"
    assert jnp.allclose(syn_new, syn_r, atol=1e-6), "syn mismatch"
    assert jnp.allclose(mem_new, mem_r, atol=1e-6), "mem mismatch"

    print("KERNEL_OK")
</pallas_src>

<mosaic_0001>
module attributes {stable_mosaic.version = 11 : i64} {
  func.func @_stein_kernel(%arg0: i32, %arg1: memref<8x128xf32, #tpu.memory_space<vmem>>, %arg2: memref<8x128xf32, #tpu.memory_space<vmem>>, %arg3: memref<8x128xf32, #tpu.memory_space<vmem>>, %arg4: memref<8x128xf32, #tpu.memory_space<vmem>>, %arg5: memref<8x128xf32, #tpu.memory_space<vmem>>, %arg6: memref<8x128xf32, #tpu.memory_space<vmem>>) attributes {dimension_semantics = [#tpu.dimension_semantics<parallel>], iteration_bounds = array<i64: 2>, scalar_prefetch = 0 : i64, scratch_operands = 0 : i64, tpu.core_type = #tpu.core_type<tc>, window_params = [{transform_indices = @transform_0, window_bounds = array<i64: 8, 128>}, {transform_indices = @transform_1, window_bounds = array<i64: 8, 128>}, {transform_indices = @transform_2, window_bounds = array<i64: 8, 128>}, {transform_indices = @transform_3, window_bounds = array<i64: 8, 128>}, {transform_indices = @transform_4, window_bounds = array<i64: 8, 128>}, {transform_indices = @transform_5, window_bounds = array<i64: 8, 128>}]} {
    %c0 = arith.constant 0 : index
    %c0_0 = arith.constant 0 : index
    %0 = vector.load %arg3[%c0, %c0_0] : memref<8x128xf32, #tpu.memory_space<vmem>>, vector<8x128xf32>
    %cst = arith.constant 1.000000e+00 : f32
    %1 = vector.broadcast %cst : f32 to vector<8x128xf32>
    %2 = arith.subf %0, %1 : vector<8x128xf32>
    %cst_1 = arith.constant 0.000000e+00 : f32
    %3 = vector.broadcast %cst_1 : f32 to vector<8x128xf32>
    %4 = arith.cmpf oge, %2, %3 : vector<8x128xf32>
    %5 = arith.extui %4 : vector<8x128xi1> to vector<8x128xi32>
    %6 = arith.sitofp %5 : vector<8x128xi32> to vector<8x128xf32>
    %c0_2 = arith.constant 0 : index
    %c0_3 = arith.constant 0 : index
    %7 = vector.load %arg2[%c0_2, %c0_3] : memref<8x128xf32, #tpu.memory_space<vmem>>, vector<8x128xf32>
    %cst_4 = arith.constant 0.899999976 : f32
    %8 = vector.broadcast %cst_4 : f32 to vector<8x128xf32>
    %9 = arith.mulf %8, %7 : vector<8x128xf32>
    %c0_5 = arith.constant 0 : index
    %c0_6 = arith.constant 0 : index
    %10 = vector.load %arg1[%c0_5, %c0_6] : memref<8x128xf32, #tpu.memory_space<vmem>>, vector<8x128xf32>
    %11 = arith.addf %9, %10 : vector<8x128xf32>
    %cst_7 = arith.constant 5.000000e-01 : f32
    %12 = vector.broadcast %cst_7 : f32 to vector<8x128xf32>
    %13 = arith.mulf %12, %0 : vector<8x128xf32>
    %14 = arith.addf %13, %11 : vector<8x128xf32>
    %15 = arith.subf %14, %6 : vector<8x128xf32>
    %c0_8 = arith.constant 0 : index
    %c0_9 = arith.constant 0 : index
    %16 = vector.load %arg4[%c0_8, %c0_9] : memref<8x128xf32, #tpu.memory_space<vmem>>, vector<8x128xf32>
    tpu.vector_store %arg4[%c0_8, %c0_9], %6 {strides = array<i32>} : memref<8x128xf32, #tpu.memory_space<vmem>>, vector<8x128xf32>,
    %c0_10 = arith.constant 0 : index
    %c0_11 = arith.constant 0 : index
    %17 = vector.load %arg5[%c0_10, %c0_11] : memref<8x128xf32, #tpu.memory_space<vmem>>, vector<8x128xf32>
    tpu.vector_store %arg5[%c0_10, %c0_11], %11 {strides = array<i32>} : memref<8x128xf32, #tpu.memory_space<vmem>>, vector<8x128xf32>,
    %c0_12 = arith.constant 0 : index
    %c0_13 = arith.constant 0 : index
    %18 = vector.load %arg6[%c0_12, %c0_13] : memref<8x128xf32, #tpu.memory_space<vmem>>, vector<8x128xf32>
    tpu.vector_store %arg6[%c0_12, %c0_13], %15 {strides = array<i32>} : memref<8x128xf32, #tpu.memory_space<vmem>>, vector<8x128xf32>,
    return
  }
  func.func @transform_0(%arg0: i32) -> (i32, i32) {
    %c0_i32 = arith.constant 0 : i32
    %c0_i32_0 = arith.constant 0 : i32
    return %arg0, %c0_i32 : i32, i32
  }
  func.func @transform_1(%arg0: i32) -> (i32, i32) {
    %c0_i32 = arith.constant 0 : i32
    %c0_i32_0 = arith.constant 0 : i32
    return %arg0, %c0_i32 : i32, i32
  }
  func.func @transform_2(%arg0: i32) -> (i32, i32) {
    %c0_i32 = arith.constant 0 : i32
    %c0_i32_0 = arith.constant 0 : i32
    return %arg0, %c0_i32 : i32, i32
  }
  func.func @transform_3(%arg0: i32) -> (i32, i32) {
    %c0_i32 = arith.constant 0 : i32
    %c0_i32_0 = arith.constant 0 : i32
    return %arg0, %c0_i32 : i32, i32
  }
  func.func @transform_4(%arg0: i32) -> (i32, i32) {
    %c0_i32 = arith.constant 0 : i32
    %c0_i32_0 = arith.constant 0 : i32
    return %arg0, %c0_i32 : i32, i32
  }
  func.func @transform_5(%arg0: i32) -> (i32, i32) {
    %c0_i32 = arith.constant 0 : i32
    %c0_i32_0 = arith.constant 0 : i32
    return %arg0, %c0_i32 : i32, i32
  }
}

</mosaic_0001>

<bundles_post_ra>
// kernel: tpu_custom_call.1
= control target key start
LH: loop header
LB: loop body
LE: loop exit
PB: predicated region body
PF: predicated region fallthrough
CT: control target
= control target key end

     0   :  { %s1147_s0 = inlined_call_operand.vmem [shape: f32[16,128], index: 0, kind: input, shape index: {}]   ;;  %s1148_s1 = inlined_call_operand.hbm [shape: f32[16,128], index: 1, kind: input, shape index: {}, may-alias: {1,4}]   ;;  %s1149_s2 = inlined_call_operand.hbm [shape: f32[16,128], index: 2, kind: input, shape index: {}, may-alias: {2,5}]   ;;  %s1150_s3 = inlined_call_operand.hbm [shape: f32[16,128], index: 3, kind: output, shape index: {0}]   ;;  %s1151_s4 = inlined_call_operand.hbm [shape: f32[16,128], index: 4, kind: output, shape index: {1}, may-alias: {1,4}]   ;;  %s1152_s5 = inlined_call_operand.hbm [shape: f32[16,128], index: 5, kind: output, shape index: {2}, may-alias: {2,5}]  }
   0x1   :  { %1157 = sst [smem:[#allocation15_spill]] %s1147_s0 }
   0x2   :  { %11 = vsyncpa [#allocation3], 0 }
   0x3   :  { %13 = vsyncpa [#allocation3 + $0x1], 0 }
   0x4   :  { %14 = vsyncpa [#allocation6], 0 }
   0x5   :  { %16 = vsyncpa [#allocation6 + $0x1], 0 }
   0x6   :  { %17 = vsyncpa [#allocation4], 0 }
   0x7   :  { %19 = vsyncpa [#allocation4 + $0x1], 0 }
   0x8   :  { %20 = vsyncpa [#allocation9], 0 }
   0x9   :  { %22 = vsyncpa [#allocation9 + $0x1], 0  ;;  %s857_s18 = smov 0   ;;  %s859_s19 = smov 0  }
   0xa   :  { %s861_s20 = smov 0   ;;  %s863_s21 = smov 0  }
   0xb LB: > { %s878_s22 = sadd.s32 4294967295, %s819_s21   ;;  %s1155_s23 = sadd.s32 4294967294, %s819_s21   ;;  %s819_s21 = sphi %s863_s21, %s1177_s21   ;;  %s815_s20 = sphi %s861_s20, %s1176_s20   ;;  %s811_s19 = sphi %s859_s19, %s1175_s19   ;;  %s807_s18 = sphi %s857_s18, %s1174_s18  }
   0xc   : > { %s882_s24 = sadd.s32 1, %s819_s21   ;;  %s61_s25 = sadd.s32 1, %s815_s20 }
   0xd   : > { %s58_s26 = ssub.s32 %s819_s21, %s882_s24  ;;  %p68_p0 = scmp.ne.s32.totalorder %s815_s20, %s811_s19 }
   0xe   : > { %p59_p1 = scmp.eq.s32.totalorder %s58_s26, 0  ;;  %p69_p2 = scmp.eq.s32.totalorder %s819_s21, 0 }
   0xf   : > { %p74_p3 = scmp.ne.s32.totalorder %s811_s19, %s807_s18  ;;  %p75_p4 = scmp.eq.s32.totalorder %s878_s22, 0 }
  0x10   : > { %s894_s27 = scalar_select %p59_p1, %s815_s20, %s61_s25  }
  0x11   : > { %p896_p5 = por %p69_p2, %p68_p0  ;;  %p900_p6 = por %p75_p4, %p74_p3 }
  0x12   : > { %p124_p7 = scmp.eq.s32.totalorder %s878_s22, 1  ;;  %p130_p8 = scmp.eq.s32.totalorder %s1155_s23, 1 }
  0x13   : > { %s1159_s29 = scalar_select %p900_p6, 1, 0 }
  0x14   : > { %p594_p10 = scmp.lt.s32.totalorder %s819_s21, 2  ;;  %p909_p11 = por %p124_p7, %p68_p0 }
  0x15   : > { %p913_p12 = por %p130_p8, %p74_p3  ;;  %s918_s7 = sand.u32 1, %s815_s20  }
  0x16   : > { %s1160_s30 = scalar_select %p909_p11, 1, 0 }
  0x17   : > { %s1161_s6 = scalar_select %p913_p12, 1, 0 }
  0x18   : > { %s547_s8 = sshll.u32 %s819_s21, 7  ;;  %s546_s9 = sshll.u32 %s918_s7, 3 }
  0x19   : > { %s927_s12 = scalar_lea.hbm %s1148_s1, %s547_s8  ;;  %s213_s13 = scalar_lea.vmem [#allocation2], %s546_s9 }
  0x1a   : > { %s220_s14 = sshll.u32 %s213_s13, 4  ;;  %p933_p13 = pnand %p594_p10, %p896_p5  ;;  %s937_s14 = int_to_ptr.vmem [resolvable:$true] %s220_s14 }
  0x1b   : > { %s210_s16 = scalar_lea.sflag [#allocation3], %s918_s7  ;;  %s629_s17 = scalar_lea.hbm %s927_s12, 128 }
  0x1c   : > { %p630_p2 = scmp.ne.s32.totalorder %s927_s12, %s629_s17  ;;  %p631_p3 = pneg %p933_p13 }
  0x1d   : > { %s634_s28 = scalar_lea.hbm %s1148_s1, 256  ;;  %p635_p5 = scmp.lt.u32.totalorder %s927_s12, %s1148_s1 }
  0x1e   : > { %p632_p4 = pnand %p631_p3, %p630_p2  ;;  %p636_p8 = scmp.lt.u32.totalorder %s634_s28, %s629_s17 }
  0x1f   : > { %p638_p9 = scmp.lt.u32.totalorder %s629_s17, %s927_s12 }
  0x20   : > { %p633_p7 = pneg %p632_p4  ;;  %p637_p10 = por %p636_p8, %p635_p5 }
  0x22   : > { %p639_p0 = por %p638_p9, %p637_p10 }
  0x24   : > { %p640_p1 = pnand %p639_p0, %p633_p7 }
  0x26   : > { %643 = shalt.err (!%p640_p1)
}
  0x27   : > { %s644_s13 = scalar_lea.vmem %s937_s14, 128  ;;  %s821_s25 = smov [#allocation2]  }
  0x28   : > { %p645_p2 = scmp.ne.s32.totalorder %s937_s14, %s644_s13  ;;  %s649_s26 = sshll.u32 %s821_s25, 4  ;;  %s650_s26 = int_to_ptr.vmem [resolvable:$false] %s649_s26 }
  0x29   : > { %s651_s10 = scalar_lea.vmem %s650_s26, 256  ;;  %p652_p11 = scmp.lt.s32.totalorder %s937_s14, %s650_s26 }
  0x2a   : > { %p647_p4 = pnand %p645_p2, %p631_p3  ;;  %p653_p5 = scmp.lt.s32.totalorder %s651_s10, %s644_s13 }
  0x2c   : > { %p648_p12 = pneg %p647_p4  ;;  %p654_p8 = por %p653_p5, %p652_p11 }
  0x2e   : > { %p655_p9 = pnand %p654_p8, %p648_p12 }
  0x30   : > { %658 = shalt.err (!%p655_p9)
}
  0x31   : > { %580 = dma.hbm_to_vmem [thread:$0]  (!%p933_p13), %s927_s12, 128, %s937_s14, %s210_s16  }
  0x32   : > { %p1163_p0 = scmp.lt.s32.totalorder %s819_s21, 3  ;;  %p1164_p1 = scmp.ge.s32.totalorder %s819_s21, 1 }
  0x33   : > { %s980_s13 = scalar_lea.hbm %s1149_s2, %s547_s8  ;;  %s231_s25 = scalar_lea.vmem [#allocation5], %s546_s9 }
  0x34   : > { %p971_p7 = pnand %p1164_p1, %p1163_p0  ;;  %s238_s26 = sshll.u32 %s231_s25, 4  ;;  %s239_s26 = int_to_ptr.vmem [resolvable:$true] %s238_s26 }
  0x35   : > { %s228_s12 = scalar_lea.sflag [#allocation6], %s918_s7  ;;  %s659_s14 = scalar_lea.hbm %s980_s13, 128 }
  0x36   : > { %s1165_s17 = scalar_select %p971_p7, 1, 0 }
  0x37   : > { %p660_p11 = scmp.ne.s32.totalorder %s980_s13, %s659_s14  ;;  %s664_s8 = scalar_lea.hbm %s1149_s2, 256 }
  0x38   : > { %p665_p2 = scmp.lt.u32.totalorder %s980_s13, %s1149_s2  ;;  %p666_p4 = scmp.lt.u32.totalorder %s664_s8, %s659_s14 }
  0x39   : > { %p662_p12 = pnand %p660_p11, %p631_p3  ;;  %p668_p8 = scmp.lt.u32.totalorder %s659_s14, %s980_s13 }
  0x3a   : > { %p667_p5 = por %p666_p4, %p665_p2 }
  0x3b   : > { %p663_p10 = pneg %p662_p12 }
  0x3c   : > { %p669_p9 = por %p668_p8, %p667_p5 }
  0x3e   : > { %p670_p0 = pnand %p669_p9, %p663_p10 }
  0x40   : > { %673 = shalt.err (!%p670_p0)
}
  0x41   : > { %s674_s7 = scalar_lea.vmem %s239_s26, 128  ;;  %s822_s9 = smov [#allocation5]  }
  0x42   : > { %p675_p1 = scmp.ne.s32.totalorder %s239_s26, %s674_s7  ;;  %s679_s25 = sshll.u32 %s822_s9, 4  ;;  %s680_s25 = int_to_ptr.vmem [resolvable:$false] %s679_s25 }
  0x43   : > { %s681_s16 = scalar_lea.vmem %s680_s25, 256  ;;  %p682_p6 = scmp.lt.s32.totalorder %s239_s26, %s680_s25 }
  0x44   : > { %p677_p11 = pnand %p675_p1, %p631_p3  ;;  %p683_p7 = scmp.lt.s32.totalorder %s681_s16, %s674_s7 }
  0x46   : > { %p678_p12 = pneg %p677_p11  ;;  %p684_p2 = por %p683_p7, %p682_p6 }
  0x48   : > { %p685_p4 = pnand %p684_p2, %p678_p12 }
  0x4a   : > { %688 = shalt.err (!%p685_p4)
}
  0x4b   : > { %583 = dma.hbm_to_vmem [thread:$0]  (!%p933_p13), %s980_s13, 128, %s239_s26, %s228_s12  }
  0x4c   : > { %p1166_p10 = scmp.ne.s32.totalorder %s1165_s17, 0 }
  0x4d   : > { %s1007_s14 = sand.u32 (!%p1166_p10), 1, %s811_s19   ;;  %p1167_p6 = scmp.ne.s32.totalorder (!%p1166_p10), %s1159_s29, 0 }
  0x4e   : > { %247 = sbr.rel (%p1166_p10) target bundleno = 166 (0xa6), region = 32  ;;  %s1010_s10 = sshll.u32 (!%p1166_p10), %s1007_s14, 3 }
  0x4f   : > { %s250_s8 = scalar_lea.sflag (!%p1166_p10), [#allocation3], %s1007_s14  ;;  %s253_s28 = scalar_lea.vmem (!%p1166_p10), [#allocation2], %s1010_s10 }
  0x55   : > { %790 = dma.done.wait (%p1167_p6), %s250_s8, 128  }
  0x56   : > { %792 = vsyncadd (%p1167_p6), %s250_s8, 4294967168  ;;  %s259_s15 = scalar_lea.sflag [#allocation6], %s1007_s14  ;;  %s262_s17 = scalar_lea.vmem [#allocation5], %s1010_s10 }
  0x57   : > { %794 = dma.done.wait (%p1167_p6), %s259_s15, 128  }
  0x58   : > { %796 = vsyncadd (%p1167_p6), %s259_s15, 4294967168  ;;  %p308_p13 = scmp.lt.s32.totalorder %s878_s22, 1  ;;  %s1168_s0 = sld [smem:[#allocation15_spill]]  ;;  %v317_v0 = vld [vmem:[%s253_s28] sm:$0xff]  ;;  %v312_v2 = vld [vmem:[%s262_s17] sm:$0xff]  ;;  %v823_v7 = vmov 0.0  }
  0x59   : > { %s300_s9 = scalar_lea.vmem [#allocation8], %s1010_s10  ;;  %s293_s16 = scalar_lea.vmem [#allocation7], %s1010_s10  ;;  %v318_v3 = vmul.f32 0.9, %v317_v0  ;;  %v557_v4 = vadd.f32 -1.0, %v312_v2  ;;  %v321_v5 = vmul.f32 0.5, %v312_v2 }
  0x5a   : > { %s309_s13 = scalar_select %p308_p13, %s878_s22, 1 }
  0x5b   : > { %s364_s25 = sshll.u32 %s300_s9, 4  ;;  %s351_s29 = sshll.u32 %s293_s16, 4  ;;  %vm314_vm0 = vcmp.ge.f32.partialorder %v557_v4, 0.0  ;;  %s1032_s25 = int_to_ptr.vmem [resolvable:$true] %s364_s25  ;;  %s1035_s29 = int_to_ptr.vmem [resolvable:$true] %s351_s29 }
  0x5c   : > { %s556_s26 = sshll.u32 %s309_s13, 3  ;;  %s332_s8 = sand.u32 1, %s878_s22   ;;  %v558_v8 = vsel %vm314_vm0, 1.0, %v823_v7 }
  0x5d   : > { %s562_s15 = sshll.u32 %s878_s22, 7  ;;  %s1156_s13 = scalar_lea.vmem [#allocation10], %s1010_s10  ;;  %324 = vst [vmem:[%s293_s16] sm:$0xff] %v558_v8 }
  0x5e   : > { %s311_s7 = scalar_lea.vmem %s1168_s0, %s556_s26  ;;  %s377_s26 = sshll.u32 %s1156_s13, 4  ;;  %s1050_s26 = int_to_ptr.vmem [resolvable:$true] %s377_s26 }
  0x5f   : > { %v319_v1 = vld [vmem:[%s311_s7] sm:$0xff]  ;;  %s1043_s17 = scalar_lea.hbm %s1151_s4, %s562_s15  ;;  %s1048_s22 = scalar_lea.hbm %s1150_s3, %s562_s15 }
  0x60   : > { %v320_v6 = vadd.f32 %v319_v1, %v318_v3  ;;  %s1055_s0 = scalar_lea.hbm %s1152_s5, %s562_s15  ;;  %s1057_s28 = scalar_lea.sflag [#allocation9], %s332_s8 }
  0x61   : > { %s689_s12 = scalar_lea.vmem %s1032_s25, 128  ;;  %p1169_p7 = scmp.ne.s32.totalorder %s1160_s30, 0 }
  0x62   : > { %325 = vst [vmem:[%s300_s9] sm:$0xff] %v320_v6  ;;  %v322_v9 = vadd.f32 %v321_v5, %v320_v6  ;;  %p690_p3 = scmp.ne.s32.totalorder %s1032_s25, %s689_s12  ;;  %s824_s11 = smov [#allocation8]  }
  0x63   : > { %s693_s7 = sshll.u32 %s824_s11, 4  ;;  %s694_s7 = int_to_ptr.vmem [resolvable:$false] %s693_s7 }
  0x64   : > { %p691_p5 = pnand %p690_p3, %p1169_p7  ;;  %s695_s9 = scalar_lea.vmem %s694_s7, 256 }
  0x65   : > { %p696_p9 = scmp.lt.s32.totalorder %s1032_s25, %s694_s7  ;;  %p697_p0 = scmp.lt.s32.totalorder %s695_s9, %s689_s12 }
  0x66   : > { %p692_p8 = pneg %p691_p5 }
  0x67   : > { %p698_p1 = por %p697_p0, %p696_p9 }
  0x69   : > { %p699_p11 = pnand %p698_p1, %p692_p8 }
  0x6b   : > { %702 = shalt.err (!%p699_p11)
}
  0x6c   : > { %s703_s23 = scalar_lea.hbm %s1043_s17, 128  ;;  %s707_s15 = scalar_lea.hbm %s1151_s4, 256 }
  0x6d   : > { %p704_p12 = scmp.ne.s32.totalorder %s1043_s17, %s703_s23  ;;  %p708_p10 = scmp.lt.u32.totalorder %s1043_s17, %s1151_s4 }
  0x6e   : > { %p709_p6 = scmp.lt.u32.totalorder %s707_s15, %s703_s23  ;;  %p711_p3 = scmp.lt.u32.totalorder %s703_s23, %s1043_s17 }
  0x6f   : > { %p705_p2 = pnand %p704_p12, %p1169_p7 }
  0x70   : > { %p710_p13 = por %p709_p6, %p708_p10 }
  0x71   : > { %p706_p4 = pneg %p705_p2 }
  0x72   : > { %p712_p5 = por %p711_p3, %p710_p13 }
  0x74   : > { %p713_p8 = pnand %p712_p5, %p706_p4 }
  0x76   : > { %716 = shalt.err (!%p713_p8)
}
  0x77   : > { %572 = dma.vmem_to_hbm [thread:$0]  (%p1169_p7), %s1032_s25, 128, %s1043_s17, %s1057_s28   ;;  %v323_v10 = vsub.f32 %v322_v9, %v558_v8 }
  0x78   : > { %s328_s12 = scalar_lea.sflag [#allocation4], %s1007_s14  ;;  %s717_s7 = scalar_lea.vmem %s1035_s29, 128 }
  0x79   : > { %p718_p9 = scmp.ne.s32.totalorder %s1035_s29, %s717_s7  ;;  %s825_s9 = smov [#allocation7]  }
  0x7a   : > { %s721_s23 = sshll.u32 %s825_s9, 4  ;;  %s722_s23 = int_to_ptr.vmem [resolvable:$false] %s721_s23 }
  0x7b   : > { %p719_p0 = pnand %p718_p9, %p1169_p7  ;;  %s723_s16 = scalar_lea.vmem %s722_s23, 256 }
  0x7c   : > { %p724_p11 = scmp.lt.s32.totalorder %s1035_s29, %s722_s23  ;;  %p725_p12 = scmp.lt.s32.totalorder %s723_s16, %s717_s7 }
  0x7d   : > { %p720_p1 = pneg %p719_p0 }
  0x7e   : > { %p726_p2 = por %p725_p12, %p724_p11 }
  0x80   : > { %p727_p4 = pnand %p726_p2, %p720_p1 }
  0x82   : > { %730 = shalt.err (!%p727_p4)
}
  0x83   : > { %s731_s14 = scalar_lea.hbm %s1048_s22, 128  ;;  %s735_s8 = scalar_lea.hbm %s1150_s3, 256 }
  0x84   : > { %p732_p10 = scmp.ne.s32.totalorder %s1048_s22, %s731_s14  ;;  %p736_p3 = scmp.lt.u32.totalorder %s1048_s22, %s1150_s3 }
  0x85   : > { %p737_p5 = scmp.lt.u32.totalorder %s735_s8, %s731_s14  ;;  %p739_p9 = scmp.lt.u32.totalorder %s731_s14, %s1048_s22 }
  0x86   : > { %p733_p6 = pnand %p732_p10, %p1169_p7 }
  0x87   : > { %p738_p8 = por %p737_p5, %p736_p3 }
  0x88   : > { %p734_p13 = pneg %p733_p6 }
  0x89   : > { %p740_p0 = por %p739_p9, %p738_p8 }
  0x8b   : > { %p741_p1 = pnand %p740_p0, %p734_p13 }
  0x8d   : > { %744 = shalt.err (!%p741_p1)
}
  0x8e   : > { %571 = dma.vmem_to_hbm [thread:$0]  (%p1169_p7), %s1035_s29, 128, %s1048_s22, %s328_s12  }
  0x8f   : > { %s1170_s11 = scalar_lea.vmem [#allocation10], %s1010_s10  ;;  %s745_s7 = scalar_lea.vmem %s1050_s26, 128 }
  0x90   : > { %326 = vst [vmem:[%s1170_s11] sm:$0xff] %v323_v10  ;;  %p746_p11 = scmp.ne.s32.totalorder %s1050_s26, %s745_s7  ;;  %s826_s9 = smov [#allocation10]  }
  0x91   : > { %s749_s23 = sshll.u32 %s826_s9, 4  ;;  %s750_s23 = int_to_ptr.vmem [resolvable:$false] %s749_s23 }
  0x92   : > { %p747_p12 = pnand %p746_p11, %p1169_p7  ;;  %s751_s16 = scalar_lea.vmem %s750_s23, 256 }
  0x93   : > { %p752_p4 = scmp.lt.s32.totalorder %s1050_s26, %s750_s23  ;;  %p753_p10 = scmp.lt.s32.totalorder %s751_s16, %s745_s7 }
  0x94   : > { %p748_p2 = pneg %p747_p12 }
  0x95   : > { %p754_p6 = por %p753_p10, %p752_p4 }
  0x97   : > { %p755_p13 = pnand %p754_p6, %p748_p2 }
  0x99   : > { %758 = shalt.err (!%p755_p13)
}
  0x9a   : > { %s759_s10 = scalar_lea.hbm %s1055_s0, 128  ;;  %s763_s12 = scalar_lea.hbm %s1152_s5, 256 }
  0x9b   : > { %p760_p3 = scmp.ne.s32.totalorder %s1055_s0, %s759_s10  ;;  %p764_p9 = scmp.lt.u32.totalorder %s1055_s0, %s1152_s5 }
  0x9c   : > { %p765_p0 = scmp.lt.u32.totalorder %s763_s12, %s759_s10  ;;  %p767_p11 = scmp.lt.u32.totalorder %s759_s10, %s1055_s0 }
  0x9d   : > { %p761_p5 = pnand %p760_p3, %p1169_p7 }
  0x9e   : > { %p766_p1 = por %p765_p0, %p764_p9 }
  0x9f   : > { %p762_p8 = pneg %p761_p5 }
  0xa0   : > { %p768_p12 = por %p767_p11, %p766_p1 }
  0xa2   : > { %p769_p2 = pnand %p768_p12, %p762_p8 }
  0xa4   : > { %772 = shalt.err (!%p769_p2)
}
  0xa5   : > { %573 = dma.vmem_to_hbm [thread:$0]  (%p1169_p7), %s1050_s26, 128, %s1055_s0, %s1057_s28  }
  0xa6 PF: > { %s389_s17 = sand.u32 1, %s807_s18   ;;  %p1171_p4 = scmp.ne.s32.totalorder %s1161_s6, 0 }
  0xa7   : > { %p1172_p10 = scmp.ge.s32.totalorder %s819_s21, 2  ;;  %s390_s8 = scalar_lea.sflag [#allocation4], %s389_s17 }
  0xa9   : > { %p585_p6 = pnand %p1172_p10, %p1171_p4 }
  0xab   : > { %798 = dma.done.wait (!%p585_p6), %s390_s8, 128  }
  0xac   : > { %800 = vsyncadd (!%p585_p6), %s390_s8, 4294967168  ;;  %s1173_s15 = sadd.s32 4294967294, %s819_s21  }
  0xad   : > { %s398_s13 = sand.u32 1, %s1173_s15  }
  0xae   : > { %s399_s11 = scalar_lea.sflag [#allocation9], %s398_s13 }
  0xaf   : > { %802 = dma.done.wait (!%p585_p6), %s399_s11, 256  }
  0xb0   : > { %804 = vsyncadd (!%p585_p6), %s399_s11, 4294967040  ;;  %p25_p7 = scmp.ge.s32.totalorder %s882_s24, 4   ;;  %s1174_s18 = smov %s811_s19 }
  0xb1   : > { %s1175_s19 = smov %s815_s20  ;;  %s1176_s20 = smov %s894_s27 }
  0xb2   : > { %s1177_s21 = smov %s882_s24  ;;  %27 = sbr.rel (!%p25_p7) target bundleno = 11 (0xb), region = 125 }
  0xb9   :  { %413 = vsyncpa [#allocation3], 1 }
  0xba   :  { %415 = vsyncpa [#allocation3 + $0x1], 1 }
  0xbb   :  { %416 = vsyncpa [#allocation6], 1 }
  0xbc   :  { %418 = vsyncpa [#allocation6 + $0x1], 1 }
  0xbd   :  { %419 = vsyncpa [#allocation4], 1 }
  0xbe   :  { %421 = vsyncpa [#allocation4 + $0x1], 1 }
  0xbf   :  { %422 = vsyncpa [#allocation9], 1 }
  0xc0   :  { %424 = vsyncpa [#allocation9 + $0x1], 1 }

</bundles_post_ra>
